<compile_context>
chip_gen: v6e
topology: v6e:2x2x1
jax: 0.10.0
libtpu: 0.0.40
codegen_flags: <defaults>
</compile_context>

<pallas_src>
import functools

import jax
import jax.numpy as jnp
from jax import lax
from jax.experimental import pallas as pl
from jax.experimental.pallas import tpu as pltpu


C_PAD = 128                       # lane-dense padding of the class dimension
NEG_BIG = -1e9                    # additive mask value for non-edges
VMEM_LIMIT = 32 * 1024 * 1024     # safe on v5e/v6e/v7x at these tile sizes


def _compiler_params():
    return pltpu.CompilerParams(
        dimension_semantics=("parallel",),   # row tiles are independent
        vmem_limit_bytes=VMEM_LIMIT)


# ------------------------------------------------------------------ kernels --

def project_kernel(x_ref, waug_ref, h_ref, f_ref, *, f_out):
    """h_aug = x_tile @ [W | W@a_src | W@a_dst | pad]  (bf16 in, f32 accum)."""
    out = jnp.dot(x_ref[...], waug_ref[...],
                  preferred_element_type=jnp.float32)        # (TM, f_out+128)
    h_ref[...] = out[:, :f_out].astype(h_ref.dtype)          # bf16 features
    f_ref[...] = out[:, f_out:]                              # f32 [f_src|f_dst|0..]


def _attention_agg(f_ref, fdst_ref, bias_ref, h_ref):
    """Masked row softmax over neighbors + alpha @ h aggregation (f32 accum)."""
    f_src = f_ref[:, 0:1]                                    # (TM, 1)  f32
    e = f_src + fdst_ref[...]                                # (TM, Np) f32
    e = jnp.maximum(e, jnp.float32(0.2) * e)                 # LeakyReLU(0.2)
    e = e + bias_ref[...].astype(jnp.float32)                # additive edge mask
    e = e - jnp.max(e, axis=-1, keepdims=True)
    p = jnp.exp(e)
    alpha = p * pl.reciprocal(jnp.sum(p, axis=-1, keepdims=True), approx=True)
    return jnp.dot(alpha.astype(h_ref.dtype), h_ref[...],
                   preferred_element_type=jnp.float32)       # (TM, F)


def attend_project_kernel(f_ref, fdst_ref, bias_ref, h_ref, waug_ref,
                          h_out_ref, f_out_ref, *, f_next):
    """ReLU(attention aggregation) fused with the NEXT layer's projection."""
    agg = _attention_agg(f_ref, fdst_ref, bias_ref, h_ref)
    x_next = jnp.maximum(agg, 0.0)                           # ReLU
    proj = jnp.dot(x_next.astype(waug_ref.dtype), waug_ref[...],
                   preferred_element_type=jnp.float32)       # (TM, f_next+128)
    h_out_ref[...] = proj[:, :f_next].astype(h_out_ref.dtype)
    f_out_ref[...] = proj[:, f_next:]


def attend_final_kernel(f_ref, fdst_ref, bias_ref, h_ref, o_ref, *, n_classes):
    """Last attention layer + class softmax (matches F.softmax(x, 1))."""
    logits = _attention_agg(f_ref, fdst_ref, bias_ref, h_ref)    # (TM, C_PAD)
    col = lax.broadcasted_iota(jnp.int32, logits.shape, 1)
    z = jnp.where(col < n_classes, logits, jnp.float32(-1e30))   # mask padded lanes
    z = z - jnp.max(z, axis=-1, keepdims=True)
    pz = jnp.exp(z)
    o_ref[...] = (pz / jnp.sum(pz, axis=-1, keepdims=True)).astype(o_ref.dtype)


# -------------------------------------------------------------- call wrappers --

def _project(x_bf16, waug, f_out, tile_m):
    n_pad, f_in = x_bf16.shape
    grid = (n_pad // tile_m,)
    return pl.pallas_call(
        functools.partial(project_kernel, f_out=f_out),
        out_shape=(jax.ShapeDtypeStruct((n_pad, f_out), jnp.bfloat16),
                   jax.ShapeDtypeStruct((n_pad, 128), jnp.float32)),
        grid=grid,
        in_specs=[pl.BlockSpec((tile_m, f_in), lambda i: (i, 0)),
                  pl.BlockSpec((f_in, f_out + 128), lambda i: (0, 0))],
        out_specs=(pl.BlockSpec((tile_m, f_out), lambda i: (i, 0)),
                   pl.BlockSpec((tile_m, 128), lambda i: (i, 0))),
        compiler_params=_compiler_params(),
    )(x_bf16, waug)


def _attend_project(f, bias, h, waug, f_next, tile_m):
    n_pad, f_cur = h.shape
    fdst_row = f[:, 1].reshape(1, n_pad)     # lane-dense (1, N) row (JAX glue)
    grid = (n_pad // tile_m,)
    return pl.pallas_call(
        functools.partial(attend_project_kernel, f_next=f_next),
        out_shape=(jax.ShapeDtypeStruct((n_pad, f_next), jnp.bfloat16),
                   jax.ShapeDtypeStruct((n_pad, 128), jnp.float32)),
        grid=grid,
        in_specs=[pl.BlockSpec((tile_m, 128), lambda i: (i, 0)),     # f (src)
                  pl.BlockSpec((1, n_pad), lambda i: (0, 0)),        # f_dst row
                  pl.BlockSpec((tile_m, n_pad), lambda i: (i, 0)),   # edge bias
                  pl.BlockSpec((n_pad, f_cur), lambda i: (0, 0)),    # h (all nodes)
                  pl.BlockSpec((f_cur, f_next + 128), lambda i: (0, 0))],
        out_specs=(pl.BlockSpec((tile_m, f_next), lambda i: (i, 0)),
                   pl.BlockSpec((tile_m, 128), lambda i: (i, 0))),
        compiler_params=_compiler_params(),
    )(f, fdst_row, bias, h, waug)


def _attend_final(f, bias, h, n_classes, tile_m):
    n_pad, c_pad = h.shape
    fdst_row = f[:, 1].reshape(1, n_pad)
    grid = (n_pad // tile_m,)
    return pl.pallas_call(
        functools.partial(attend_final_kernel, n_classes=n_classes),
        out_shape=jax.ShapeDtypeStruct((n_pad, c_pad), jnp.float32),
        grid=grid,
        in_specs=[pl.BlockSpec((tile_m, 128), lambda i: (i, 0)),
                  pl.BlockSpec((1, n_pad), lambda i: (0, 0)),
                  pl.BlockSpec((tile_m, n_pad), lambda i: (i, 0)),
                  pl.BlockSpec((n_pad, c_pad), lambda i: (0, 0))],
        out_specs=pl.BlockSpec((tile_m, c_pad), lambda i: (i, 0)),
        compiler_params=_compiler_params(),
    )(f, fdst_row, bias, h)


# ------------------------------------------------------------------- wrapper --

def _make_waug(w, a_src, a_dst, f_out_pad):
    """bf16 [W | W@a_src | W@a_dst | 0-pad]: attention folded into the MXU pass."""
    f_in, f_out = w.shape
    w_p = jnp.pad(w, ((0, 0), (0, f_out_pad - f_out)))
    a_cols = jnp.concatenate([w @ a_src, w @ a_dst], axis=1)          # (f_in, 2)
    a_cols = jnp.pad(a_cols, ((0, 0), (0, 128 - a_cols.shape[1])))    # (f_in, 128)
    return jnp.concatenate([w_p, a_cols], axis=1).astype(jnp.bfloat16)


def init_gat_params(key, in_feat, n_classes):
    """Deterministic xavier-ish init of all three GAT layers."""
    dims = [(in_feat, 512), (512, 256), (256, n_classes)]
    params = []
    for (fi, fo) in dims:
        key, k_w, k_as, k_ad = jax.random.split(key, 4)
        scale_w = jnp.sqrt(2.0 / (fi + fo))
        w = jax.random.normal(k_w, (fi, fo), jnp.float32) * scale_w
        scale_a = jnp.sqrt(2.0 / (fo + 1))
        a_src = jax.random.normal(k_as, (fo, 1), jnp.float32) * scale_a
        a_dst = jax.random.normal(k_ad, (fo, 1), jnp.float32) * scale_a
        params.append((w, a_src, a_dst))
    return params


def gat_forward(x, edge_idx, params, n_classes, tile_m=None):
    """Full GAT.forward: relu(g1) -> relu(g2) -> softmax(g3, axis=1)."""
    n, f_in = x.shape
    n_pad = pl.cdiv(n, 128) * 128
    if tile_m is None:
        tile_m = min(128, n_pad)   # 128-multiple row tiles (bump to 256 on v6e/v7x)
    assert n_pad % tile_m == 0 and tile_m % 16 == 0

    # Pad nodes to a lane-dense multiple of 128. Padded rows have zero features
    # and are non-edges for every real row, so they never contaminate real
    # outputs; self-loops guarantee every row has at least one valid neighbor.
    x_bf16 = jnp.zeros((n_pad, f_in), jnp.bfloat16).at[:n].set(
        x.astype(jnp.bfloat16))

    # Dense additive edge bias (0 on edges / self-loops, -1e9 elsewhere),
    # shipped once in bf16 and reused by all three attention layers.
    adj = jnp.zeros((n_pad, n_pad), jnp.float32)
    adj = adj.at[edge_idx[0], edge_idx[1]].set(1.0)
    adj = jnp.maximum(adj, jnp.eye(n_pad, dtype=jnp.float32))
    bias = jnp.where(adj > 0, 0.0, NEG_BIG).astype(jnp.bfloat16)

    (w1, a1s, a1d), (w2, a2s, a2d), (w3, a3s, a3d) = params
    w1aug = _make_waug(w1, a1s, a1d, 512)
    w2aug = _make_waug(w2, a2s, a2d, 256)
    w3aug = _make_waug(w3, a3s, a3d, C_PAD)   # class dim padded to 128 lanes

    # Layer 1 projection, then each attention call fuses
    # "softmax-aggregate -> ReLU -> next projection".
    h1, f1 = _project(x_bf16, w1aug, 512, tile_m)
    h2, f2 = _attend_project(f1, bias, h1, w2aug, 256, tile_m)
    h3, f3 = _attend_project(f2, bias, h2, w3aug, C_PAD, tile_m)
    out_pad = _attend_final(f3, bias, h3, n_classes, tile_m)

    return out_pad[:n, :n_classes]


if __name__ == "__main__":
    N = 64          # number of graph nodes
    IN_FEAT = 32    # input feature dim
    N_CLASSES = 8
    N_EDGES = 256

    key = jax.random.PRNGKey(0)
    k_x, k_e, k_p = jax.random.split(key, 3)

    x = jax.random.normal(k_x, (N, IN_FEAT), jnp.float32)
    edge_idx = jax.random.randint(k_e, (2, N_EDGES), 0, N, jnp.int32)
    params = init_gat_params(k_p, IN_FEAT, N_CLASSES)

    # tile_m=64 -> grid of 2 row tiles over the 128 padded nodes, exercising
    # the pipelined multi-tile path (production would use 128/256-row tiles).
    out = jax.block_until_ready(
        gat_forward(x, edge_idx, params, N_CLASSES, tile_m=64))

    assert out.shape == (N, N_CLASSES)
    assert bool(jnp.all(jnp.isfinite(out)))
    # rows of the final softmax should sum to ~1
    assert bool(jnp.allclose(jnp.sum(out, axis=1), 1.0, atol=1e-3))

    print("KERNEL_OK")
</pallas_src>

<mosaic_0001>
module attributes {stable_mosaic.version = 11 : i64} {
  func.func @project_kernel(%arg0: i32, %arg1: memref<64x32xbf16, #tpu.memory_space<vmem>>, %arg2: memref<32x640xbf16, #tpu.memory_space<vmem>>, %arg3: memref<64x512xbf16, #tpu.memory_space<vmem>>, %arg4: memref<64x128xf32, #tpu.memory_space<vmem>>) attributes {dimension_semantics = [#tpu.dimension_semantics<parallel>], iteration_bounds = array<i64: 2>, scalar_prefetch = 0 : i64, scratch_operands = 0 : i64, tpu.core_type = #tpu.core_type<tc>, window_params = [{transform_indices = @transform_0, window_bounds = array<i64: 64, 32>}, {pipeline_mode = #tpu.pipeline_mode<synchronous>, transform_indices = @transform_1, window_bounds = array<i64: 32, 640>}, {transform_indices = @transform_2, window_bounds = array<i64: 64, 512>}, {transform_indices = @transform_3, window_bounds = array<i64: 64, 128>}]} {
    %c0 = arith.constant 0 : index
    %c0_0 = arith.constant 0 : index
    %0 = vector.load %arg1[%c0, %c0_0] : memref<64x32xbf16, #tpu.memory_space<vmem>>, vector<64x32xbf16>
    %c0_1 = arith.constant 0 : index
    %c0_2 = arith.constant 0 : index
    %1 = vector.load %arg2[%c0_1, %c0_2] : memref<32x640xbf16, #tpu.memory_space<vmem>>, vector<32x640xbf16>
    %cst = arith.constant dense<0.000000e+00> : vector<64x640xf32>
    %2 = tpu.matmul %0, %1, %cst {dimension_numbers = #tpu.dot_dimension_numbers<[1], [0], [0], [1], [0, 0, 1, 1], [], []>} : vector<64x32xbf16>, vector<32x640xbf16>, vector<64x640xf32> -> vector<64x640xf32>
    %3 = vector.extract_strided_slice %2 {offsets = [0, 0], sizes = [64, 512], strides = [1, 1]} : vector<64x640xf32> to vector<64x512xf32>
    %4 = arith.truncf %3 : vector<64x512xf32> to vector<64x512xbf16>
    %c0_3 = arith.constant 0 : index
    %c0_4 = arith.constant 0 : index
    %5 = vector.load %arg3[%c0_3, %c0_4] : memref<64x512xbf16, #tpu.memory_space<vmem>>, vector<64x512xbf16>
    tpu.vector_store %arg3[%c0_3, %c0_4], %4 {strides = array<i32>} : memref<64x512xbf16, #tpu.memory_space<vmem>>, vector<64x512xbf16>,
    %6 = vector.extract_strided_slice %2 {offsets = [0, 512], sizes = [64, 128], strides = [1, 1]} : vector<64x640xf32> to vector<64x128xf32>
    %c0_5 = arith.constant 0 : index
    %c0_6 = arith.constant 0 : index
    %7 = vector.load %arg4[%c0_5, %c0_6] : memref<64x128xf32, #tpu.memory_space<vmem>>, vector<64x128xf32>
    tpu.vector_store %arg4[%c0_5, %c0_6], %6 {strides = array<i32>} : memref<64x128xf32, #tpu.memory_space<vmem>>, vector<64x128xf32>,
    return
  }
  func.func @transform_0(%arg0: i32) -> (i32, i32) {
    %c0_i32 = arith.constant 0 : i32
    %c0_i32_0 = arith.constant 0 : i32
    return %arg0, %c0_i32 : i32, i32
  }
  func.func @transform_1(%arg0: i32) -> (i32, i32) {
    %c0_i32 = arith.constant 0 : i32
    %c0_i32_0 = arith.constant 0 : i32
    %c0_i32_1 = arith.constant 0 : i32
    return %c0_i32, %c0_i32_0 : i32, i32
  }
  func.func @transform_2(%arg0: i32) -> (i32, i32) {
    %c0_i32 = arith.constant 0 : i32
    %c0_i32_0 = arith.constant 0 : i32
    return %arg0, %c0_i32 : i32, i32
  }
  func.func @transform_3(%arg0: i32) -> (i32, i32) {
    %c0_i32 = arith.constant 0 : i32
    %c0_i32_0 = arith.constant 0 : i32
    return %arg0, %c0_i32 : i32, i32
  }
}

</mosaic_0001>

<bundles_post_ra>
// kernel: tpu_custom_call.1
= control target key start
LH: loop header
LB: loop body
LE: loop exit
PB: predicated region body
PF: predicated region fallthrough
CT: control target
= control target key end

     0   :  { %9 = vsyncpa [#allocation3], 0  ;;  %s1245_s0 = inlined_call_operand.vmem [shape: bf16[128,32], index: 0, kind: input, shape index: {}]   ;;  %s1246_s1 = inlined_call_operand.vmem [shape: bf16[32,640], index: 1, kind: input, shape index: {}]   ;;  %s1247_s2 = inlined_call_operand.hbm [shape: bf16[128,512], index: 2, kind: output, shape index: {0}]   ;;  %s1248_s3 = inlined_call_operand.hbm [shape: f32[128,128], index: 3, kind: output, shape index: {1}]  }
   0x1   :  { %11 = vsyncpa [#allocation3 + $0x1], 0 }
   0x2   :  { %12 = vsyncpa [#allocation5], 0 }
   0x3   :  { %14 = vsyncpa [#allocation5 + $0x1], 0  ;;  %s1037_s12 = smov 0   ;;  %s1039_s13 = smov 0  }
   0x4   :  { %s1041_s14 = smov 0   ;;  %s1043_s15 = smov 0  }
   0x5 LB: > { %s1058_s16 = sadd.s32 4294967295, %s1008_s15   ;;  %s751_s17 = sadd.s32 4294967294, %s1008_s15   ;;  %s1008_s15 = sphi %s1043_s15, %s1254_s15   ;;  %s1004_s14 = sphi %s1041_s14, %s1253_s14   ;;  %s1000_s13 = sphi %s1039_s13, %s1252_s13   ;;  %s996_s12 = sphi %s1037_s12, %s1251_s12  }
   0x6   : > { %s1062_s18 = sadd.s32 1, %s1008_s15   ;;  %s74_s19 = sadd.s32 1, %s1004_s14 }
   0x7   : > { %s71_s20 = ssub.s32 %s1008_s15, %s1062_s18  ;;  %p84_p0 = scmp.ne.s32.totalorder %s1004_s14, %s1000_s13 }
   0x8   : > { %p72_p1 = scmp.eq.s32.totalorder %s71_s20, 0  ;;  %p85_p2 = scmp.eq.s32.totalorder %s1058_s16, 1 }
   0x9   : > { %p90_p3 = scmp.ne.s32.totalorder %s1000_s13, %s996_s12  ;;  %p91_p4 = scmp.eq.s32.totalorder %s751_s17, 1 }
   0xa   : > { %s1073_s21 = scalar_select %p72_p1, %s1004_s14, %s74_s19  }
   0xb   : > { %p1075_p5 = por %p85_p2, %p84_p0  ;;  %p1079_p6 = por %p91_p4, %p90_p3 }
   0xc   : > { %p754_p7 = scmp.ge.s32.totalorder %s1008_s15, 1  ;;  %p147_p8 = scmp.lt.s32.totalorder %s1008_s15, 3 }
   0xe   : > { %p148_p9 = pnand %p754_p7, %p147_p8 }
   0xf   : > { %s757_s26 = sshll.u32 (!%p148_p9), %s1058_s16, 3  ;;  %s1132_s4 = sand.u32 (!%p148_p9), 1, %s1000_s13  }
  0x10   : > { %151 = sbr.rel (%p148_p9) target bundleno = 299 (0x12b), region = 28  ;;  %p177_p10 = scmp.lt.s32.totalorder (!%p148_p9), %s757_s26, 15 }
  0x11   : > { %s755_s5 = sshll.u32 (!%p148_p9), %s1132_s4, 7  ;;  %s756_s7 = sshll.u32 (!%p148_p9), %s1132_s4, 6 }
  0x12   : > { %s1135_s6 = scalar_lea.vmem (!%p148_p9), [#allocation2], %s755_s5  ;;  %s1150_s8 = scalar_lea.vmem (!%p148_p9), [#allocation4], %s756_s7 }
  0x13   : > { %s657_s9 = sshll.u32 (!%p148_p9), %s1150_s8, 4  ;;  %s827_s11 = sshll.u32 (!%p148_p9), %s1058_s16, 11  ;;  %s1161_s9 = int_to_ptr.vmem [resolvable:$true] %s657_s9 }
  0x14   : > { %s641_s17 = sshll.u32 (!%p148_p9), %s1135_s6, 4  ;;  %s918_s28 = scalar_lea.vmem (!%p148_p9), %s1161_s9, 1024  ;;  %s1178_s17 = int_to_ptr.vmem [resolvable:$true] %s641_s17 }
  0x15   : > { %v900_v0 = vld [vmem:[%s1246_s1 + $0x2c] ss:$20 sps:$4 sm:$0xff]   ;;  %v902_v1 = vld [vmem:[%s1246_s1 + $0x28] ss:$20 sps:$4 sm:$0xff]   ;;  %v1010_v2 = vmov 0   ;;  %s1256_s26 = smov (!%p177_p10, %s757_s26), 15  ;;  %p919_p11 = scmp.ne.s32.totalorder %s1161_s9, %s918_s28 }
  0x16   : > { %322 = vmatprep.mubr.bf16.mxu0 %v1010_v2  ;;  %352 = vmatprep.mubr.bf16.mxu1 %v1010_v2  ;;  %v903_v3 = vld [vmem:[%s1246_s1 + $0x4] ss:$20 sps:$4 sm:$0xff]   ;;  %v905_v4 = vld [vmem:[%s1246_s1] ss:$20 sps:$4 sm:$0xff]   ;;  %s758_s10 = sshll.u32 %s1256_s26, 2  ;;  %vm277_vm0 = vcmask 261120   ;;  %s1176_s26 = scalar_lea.hbm %s1247_s2, %s827_s11 }
  0x17   : > { %302 = vmatprep.subr.bf16.mxu0 %v900_v0  ;;  %847 = vmatprep.subr.bf16.mxu1 %v900_v0  ;;  %v910_v5 = vld [vmem:[%s1246_s1 + $0x34] ss:$20 sps:$4 sm:$0xff]   ;;  %v911_v6 = vld [vmem:[%s1246_s1 + $0x38] ss:$20 sps:$4 sm:$0xff]   ;;  %v908_v7 = vld [vmem:[%s1246_s1 + $0x30] ss:$20 sps:$4 sm:$0xff]   ;;  %s180_s24 = scalar_lea.vmem %s1245_s0, %s758_s10  ;;  %p920_p12 = pnand %p919_p11, %p1075_p5 }
  0x18   : > { %303 = vmatpush1.bf16.msra.mxu0 %v902_v1  ;;  %849 = vmatpush1.bf16.msra.mxu1 %v902_v1  ;;  %v914_v8 = vld [vmem:[%s1246_s1 + $0xc] ss:$20 sps:$4 sm:$0xff]   ;;  %v907_v10 = vld [vmem:[%s180_s24 + $0x18] sm:$0xff]   ;;  %v916_v11 = vld [vmem:[%s1246_s1 + $0x10] ss:$20 sps:$4 sm:$0xff]   ;;  %s828_s10 = sshll.u32 %s1058_s16, 10 }
  0x19   : > { %304 = vmatprep.subr.bf16.mxu0 %v903_v3  ;;  %848 = vmatprep.subr.bf16.mxu1 %v903_v3  ;;  %v906_v9 = vld [vmem:[%s180_s24] sm:$0xff]   ;;  %v912_v12 = vld [vmem:[%s1246_s1 + $0x8] ss:$20 sps:$4 sm:$0xff]   ;;  %v917_v14 = vld [vmem:[%s180_s24 + $0x10] sm:$0xff]   ;;  %s627_s16 = scalar_lea.sflag [#allocation5], %s1132_s4  ;;  %p921_p13 = pneg %p920_p12 }
  0x1a   : > { %v915_v13 = vld [vmem:[%s180_s24 + $0x8] sm:$0xff]   ;;  %s1169_s24 = scalar_lea.hbm %s1248_s3, %s828_s10  ;;  %s1011_s29 = smov [#allocation4]  }
  0x1b   : > { %s922_s30 = sshll.u32 %s1011_s29, 4  ;;  %s923_s30 = int_to_ptr.vmem [resolvable:$false] %s922_s30 }
  0x1c   : > { %305 = vmatpush1.bf16.msra.mxu0 %v905_v4  ;;  %850 = vmatpush1.bf16.msra.mxu1 %v905_v4  ;;  %s924_s5 = scalar_lea.vmem %s923_s30, 2048  ;;  %p925_p0 = scmp.lt.s32.totalorder %s1161_s9, %s923_s30 }
  0x1d   : > { %375 = vmatprep.subr.bf16.mxu1 %v910_v5  ;;  %835 = vmatprep.subr.bf16.mxu0 %v911_v6  ;;  %p926_p1 = scmp.lt.s32.totalorder %s924_s5, %s918_s28 }
  0x1f   : > { %773 = vmatmul.mubr.msk.bf16.vlgmr.msra.gmra.mxu0 %vm277_vm0, %v906_v9  ;;  %776 = vmatmul.mubr.msk.bf16.vlgmr.msra.gmra.mxu1 %vm277_vm0, %v907_v10  ;;  %p927_p2 = por %p926_p1, %p925_p0 }
  0x20   : > { %376 = vmatpush1.bf16.msra.mxu1 %v908_v7  ;;  %836 = vmatpush3.bf16.msra.mxu0 %v911_v6 }
  0x21   : > { %377 = vmatprep.subr.bf16.mxu1 %v914_v8  ;;  %332 = vmatprep.mubr.bf16.mxu0 %v1010_v2  ;;  %p928_p3 = pnand %p927_p2, %p921_p13 }
  0x22   : > { %395 = vmatprep.mubr.bf16.mxu1 %v1010_v2  ;;  %837 = vmatprep.subr.bf16.mxu0 %v916_v11 }
  0x24   : > { %378 = vmatpush1.bf16.msra.mxu1 %v912_v12  ;;  %838 = vmatpush3.bf16.msra.mxu0 %v916_v11 }
  0x27   : > { %774 = vmatmul.mubr.msk.bf16.gmra.mxu0 %vm277_vm0, %v915_v13  ;;  %777 = vmatmul.mubr.msk.bf16.vlgmr.msra.gmra.mxu1 %vm277_vm0, %v906_v9 }
  0x28   : > { %342 = vmatprep.mubr.bf16.mxu0 %v1010_v2  ;;  %405 = vmatprep.mubr.bf16.mxu1 %v1010_v2 }
  0x2f   : > { %775 = vmatmul.mubr.msk.bf16.gmra.mxu0 %vm277_vm0, %v917_v14  ;;  %778 = vmatmul.mubr.msk.bf16.gmra.mxu1 %vm277_vm0, %v915_v13 }
  0x30   : > { %415 = vmatprep.mubr.bf16.mxu1 %v1010_v2  ;;  %839 = vmatprep.mubr.msk.bf16.mxu0 %vm277_vm0, %v906_v9 }
  0x37   : > { %779 = vmatmul.mubr.msk.bf16.gmra.mxu1 %vm277_vm0, %v917_v14  ;;  %840 = vmatmul.mubr.msk.bf16.vlgmr.msra.gmra.mxu0 %vm277_vm0, %v915_v13 }
  0x38   : > { %425 = vmatprep.mubr.bf16.mxu1 %v1010_v2  ;;  %843 = vmatprep.mubr.msk.bf16.mxu0 %vm277_vm0, %v917_v14 }
  0x3f   : > { %780 = vmatmul.mubr.msk.bf16.gmra.mxu1 %vm277_vm0, %v907_v10  ;;  %844 = vmatmul.mubr.msk.bf16.gmra.mxu0 %vm277_vm0, %v907_v10 }
  0xdf   : > { %v324_v15 = vpop.f32.mrf.mxu0  ;;  %v354_v16 = vpop.f32.mrf.mxu1 }
  0xe1   : > { %v326_v17 = vpop.f32.mrf.mxu0  ;;  %v356_v18 = vpop.f32.mrf.mxu1 }
  0xe2   : > { %v810_v19 = vpack.c.bf16 %v326_v17, %v324_v15  ;;  %v822_v20 = vpack.c.bf16 %v356_v18, %v354_v16 }
  0xe3   : > { %v328_v21 = vpop.f32.mrf.mxu0  ;;  %v358_v22 = vpop.f32.mrf.mxu1 }
  0xe4   : > { %597 = vst [vmem:[%s1135_s6] sm:$0xff] %v810_v19  ;;  %609 = vst [vmem:[%s1135_s6 + $0x60] sm:$0xff] %v822_v20 }
  0xe5   : > { %v330_v23 = vpop.f32.mrf.mxu0  ;;  %v360_v24 = vpop.f32.mrf.mxu1 }
  0xe6   : > { %v812_v25 = vpack.c.bf16 %v330_v23, %v328_v21  ;;  %v824_v26 = vpack.c.bf16 %v360_v24, %v358_v22 }
  0xe7   : > { %v334_v27 = vpop.f32.mrf.mxu0  ;;  %v397_v28 = vpop.f32.mrf.mxu1 }
  0xe8   : > { %599 = vst [vmem:[%s1135_s6 + $0x10] sm:$0xff] %v812_v25  ;;  %611 = vst [vmem:[%s1135_s6 + $0x70] sm:$0xff] %v824_v26 }
  0xe9   : > { %v336_v29 = vpop.f32.mrf.mxu0  ;;  %v399_v30 = vpop.f32.mrf.mxu1 }
  0xea   : > { %v814_v31 = vpack.c.bf16 %v336_v29, %v334_v27  ;;  %v811_v32 = vpack.c.bf16 %v399_v30, %v397_v28 }
  0xeb   : > { %v338_v33 = vpop.f32.mrf.mxu0  ;;  %v401_v34 = vpop.f32.mrf.mxu1 }
  0xec   : > { %601 = vst [vmem:[%s1135_s6 + $0x20] sm:$0xff] %v814_v31  ;;  %598 = vst [vmem:[%s1135_s6 + $0x8] sm:$0xff] %v811_v32 }
  0xed   : > { %v340_v35 = vpop.f32.mrf.mxu0  ;;  %v403_v36 = vpop.f32.mrf.mxu1 }
  0xee   : > { %v816_v37 = vpack.c.bf16 %v340_v35, %v338_v33  ;;  %v813_v38 = vpack.c.bf16 %v403_v36, %v401_v34 }
  0xef   : > { %v344_v39 = vpop.f32.mrf.mxu0  ;;  %v407_v40 = vpop.f32.mrf.mxu1 }
  0xf0   : > { %603 = vst [vmem:[%s1135_s6 + $0x30] sm:$0xff] %v816_v37  ;;  %600 = vst [vmem:[%s1135_s6 + $0x18] sm:$0xff] %v813_v38 }
  0xf1   : > { %v346_v41 = vpop.f32.mrf.mxu0  ;;  %v409_v42 = vpop.f32.mrf.mxu1 }
  0xf2   : > { %v818_v43 = vpack.c.bf16 %v346_v41, %v344_v39  ;;  %v815_v44 = vpack.c.bf16 %v409_v42, %v407_v40 }
  0xf3   : > { %v348_v45 = vpop.f32.mrf.mxu0  ;;  %v411_v46 = vpop.f32.mrf.mxu1 }
  0xf4   : > { %605 = vst [vmem:[%s1135_s6 + $0x40] sm:$0xff] %v818_v43  ;;  %602 = vst [vmem:[%s1135_s6 + $0x28] sm:$0xff] %v815_v44 }
  0xf5   : > { %v350_v47 = vpop.f32.mrf.mxu0  ;;  %v413_v48 = vpop.f32.mrf.mxu1 }
  0xf6   : > { %v820_v49 = vpack.c.bf16 %v350_v47, %v348_v45  ;;  %v817_v50 = vpack.c.bf16 %v413_v48, %v411_v46 }
  0xf7   : > { %v417_v51 = vpop.f32.mrf.mxu1  ;;  %v841_v52 = vpop.f32.mrf.mxu0 }
  0xf8   : > { %607 = vst [vmem:[%s1135_s6 + $0x50] sm:$0xff] %v820_v49  ;;  %604 = vst [vmem:[%s1135_s6 + $0x38] sm:$0xff] %v817_v50 }
  0xf9   : > { %615 = vst [vmem:[%s1150_s8 + $0x10] sm:$0xff] %v841_v52  ;;  %v419_v53 = vpop.f32.mrf.mxu1  ;;  %v470_v54 = vpop.f32.mrf.mxu0 }
  0xfa   : > { %v819_v55 = vpack.c.bf16 %v419_v53, %v417_v51  ;;  %613 = vst [vmem:[%s1150_s8] sm:$0xff] %v470_v54 }
  0xfb   : > { %v421_v56 = vpop.f32.mrf.mxu1  ;;  %v842_v57 = vpop.f32.mrf.mxu0 }
  0xfc   : > { %606 = vst [vmem:[%s1135_s6 + $0x48] sm:$0xff] %v819_v55  ;;  %616 = vst [vmem:[%s1150_s8 + $0x18] sm:$0xff] %v842_v57 }
  0xfd   : > { %v423_v58 = vpop.f32.mrf.mxu1  ;;  %v473_v59 = vpop.f32.mrf.mxu0 }
  0xfe   : > { %v821_v60 = vpack.c.bf16 %v423_v58, %v421_v56  ;;  %614 = vst [vmem:[%s1150_s8 + $0x8] sm:$0xff] %v473_v59 }
  0xff   : > { %v427_v61 = vpop.f32.mrf.mxu1  ;;  %v845_v62 = vpop.f32.mrf.mxu0 }
 0x100   : > { %608 = vst [vmem:[%s1135_s6 + $0x58] sm:$0xff] %v821_v60  ;;  %619 = vst [vmem:[%s1150_s8 + $0x30] sm:$0xff] %v845_v62 }
 0x101   : > { %v429_v63 = vpop.f32.mrf.mxu1  ;;  %v486_v0 = vpop.f32.mrf.mxu0 }
 0x102   : > { %v823_v1 = vpack.c.bf16 %v429_v63, %v427_v61  ;;  %617 = vst [vmem:[%s1150_s8 + $0x20] sm:$0xff] %v486_v0 }
 0x103   : > { %v431_v2 = vpop.f32.mrf.mxu1  ;;  %v846_v3 = vpop.f32.mrf.mxu0 }
 0x104   : > { %610 = vst [vmem:[%s1135_s6 + $0x68] sm:$0xff] %v823_v1  ;;  %620 = vst [vmem:[%s1150_s8 + $0x38] sm:$0xff] %v846_v3 }
 0x105   : > { %v433_v4 = vpop.f32.mrf.mxu1  ;;  %v489_v5 = vpop.f32.mrf.mxu0 }
 0x106   : > { %v825_v6 = vpack.c.bf16 %v433_v4, %v431_v2  ;;  %618 = vst [vmem:[%s1150_s8 + $0x28] sm:$0xff] %v489_v5 }
 0x107   : > { %931 = shalt.err (!%p928_p3)
}
 0x108   : > { %s932_s7 = scalar_lea.hbm %s1169_s24, 1024  ;;  %s936_s11 = scalar_lea.hbm %s1248_s3, 2048 }
 0x109   : > { %p933_p4 = scmp.ne.s32.totalorder %s1169_s24, %s932_s7  ;;  %p937_p9 = scmp.lt.s32.totalorder %s1169_s24, %s1248_s3 }
 0x10a   : > { %p938_p10 = scmp.lt.s32.totalorder %s936_s11, %s932_s7 }
 0x10b   : > { %p934_p7 = pnand %p933_p4, %p1075_p5 }
 0x10c   : > { %p939_p11 = por %p938_p10, %p937_p9 }
 0x10d   : > { %p935_p8 = pneg %p934_p7 }
 0x10f   : > { %p940_p12 = pnand %p939_p11, %p935_p8 }
 0x111   : > { %943 = shalt.err (!%p940_p12)
}
 0x112   : > { %s1012_s25 = smov 128   ;;  %s1013_s27 = smov 8   ;;  %612 = vst [vmem:[%s1135_s6 + $0x78] sm:$0xff] %v825_v6 }
 0x113   : > { %852 = dma.vmem_to_hbm [thread:$0]  (%p1075_p5), %s1161_s9, 1024, %s1169_s24, %s627_s16, %s1012_s25, %s1012_s25, %s1013_s27  }
 0x114   : > { %s622_s28 = scalar_lea.sflag [#allocation3], %s1132_s4  ;;  %s944_s29 = scalar_lea.vmem %s1178_s17, 2048 }
 0x115   : > { %p945_p13 = scmp.ne.s32.totalorder %s1178_s17, %s944_s29  ;;  %s1014_s30 = smov [#allocation2]  }
 0x116   : > { %s948_s5 = sshll.u32 %s1014_s30, 4  ;;  %s949_s5 = int_to_ptr.vmem [resolvable:$false] %s948_s5 }
 0x117   : > { %p946_p0 = pnand %p945_p13, %p1075_p5  ;;  %s950_s7 = scalar_lea.vmem %s949_s5, 4096 }
 0x118   : > { %p951_p2 = scmp.lt.s32.totalorder %s1178_s17, %s949_s5  ;;  %p952_p3 = scmp.lt.s32.totalorder %s950_s7, %s944_s29 }
 0x119   : > { %p947_p1 = pneg %p946_p0 }
 0x11a   : > { %p953_p4 = por %p952_p3, %p951_p2 }
 0x11c   : > { %p954_p7 = pnand %p953_p4, %p947_p1 }
 0x11e   : > { %957 = shalt.err (!%p954_p7)
}
 0x11f   : > { %s958_s6 = scalar_lea.hbm %s1176_s26, 2048  ;;  %s962_s16 = scalar_lea.hbm %s1247_s2, 4096 }
 0x120   : > { %p959_p8 = scmp.ne.s32.totalorder %s1176_s26, %s958_s6  ;;  %p963_p11 = scmp.lt.s32.totalorder %s1176_s26, %s1247_s2 }
 0x121   : > { %p964_p12 = scmp.lt.s32.totalorder %s962_s16, %s958_s6 }
 0x122   : > { %p960_p9 = pnand %p959_p8, %p1075_p5 }
 0x123   : > { %p965_p13 = por %p964_p12, %p963_p11 }
 0x124   : > { %p961_p10 = pneg %p960_p9 }
 0x126   : > { %p966_p0 = pnand %p965_p13, %p961_p10 }
 0x128   : > { %969 = shalt.err (!%p966_p0)
}
 0x129   : > { %s1015_s11 = smov 256   ;;  %s1016_s19 = smov 16  }
 0x12a   : > { %851 = dma.vmem_to_hbm [thread:$0]  (%p1075_p5), %s1178_s17, 2048, %s1176_s26, %s622_s28, %s1015_s11, %s1015_s11, %s1016_s19  }
 0x12b PF: > { %p862_p1 = scmp.ge.s32.totalorder %s1008_s15, 2  ;;  %s672_s20 = sand.u32 1, %s996_s12  }
 0x12c   : > { %s673_s25 = scalar_lea.sflag [#allocation3], %s672_s20 }
 0x12d   : > { %p856_p2 = pnand %p862_p1, %p1079_p6 }
 0x12f   : > { %p857_p3 = pneg %p856_p2 }
 0x131   : > { %987 = dma.done.wait (%p857_p3), %s673_s25, 2048  }
 0x132   : > { %989 = vsyncadd (%p857_p3), %s673_s25, 4294965248  ;;  %s682_s27 = scalar_lea.sflag [#allocation5], %s672_s20 }
 0x133   : > { %991 = dma.done.wait (%p857_p3), %s682_s27, 1024  }
 0x134   : > { %993 = vsyncadd (%p857_p3), %s682_s27, 4294966272  ;;  %p17_p5 = scmp.ge.s32.totalorder %s1062_s18, 4   ;;  %s1251_s12 = smov %s1000_s13 }
 0x135   : > { %s1252_s13 = smov %s1004_s14  ;;  %s1253_s14 = smov %s1073_s21 }
 0x136   : > { %s1254_s15 = smov %s1062_s18  ;;  %19 = sbr.rel (!%p17_p5) target bundleno = 5 (0x5), region = 80 }
 0x13b   :  { %687 = vsyncpa [#allocation3], 1 }
 0x13c   :  { %689 = vsyncpa [#allocation3 + $0x1], 1 }
 0x13d   :  { %690 = vsyncpa [#allocation5], 1 }
 0x13e   :  { %692 = vsyncpa [#allocation5 + $0x1], 1 }

</bundles_post_ra>
